<compile_context>
chip_gen: v6e
topology: v6e:2x2x1
jax: 0.10.0
libtpu: 0.0.40
codegen_flags: <defaults>
</compile_context>

<pallas_src>
import jax
import jax.numpy as jnp
from jax.experimental import pallas as pl
from jax.experimental.pallas import tpu as pltpu

IN_FEATURES = 128
OUT_FEATURES = 28 * 28          # 784 = 6*128 + 16 (last vreg group masked on store)
TM_MAX = 1024                   # max batch tile (fits all generations' scoped VMEM)


def _round_up(x, m):
    return ((x + m - 1) // m) * m


def _cdiv(a, b):
    return -(-a // b)


def _choose_tm(batch):
    """Adaptive batch tile: single 8-aligned tile for B <= 1024, otherwise
    near-even tiles of at most 1024 rows (minimizes masked-tail waste)."""
    batch = max(batch, 1)
    if batch <= TM_MAX:
        return _round_up(batch, 8)
    n_tiles = _cdiv(batch, TM_MAX)
    return _round_up(_cdiv(batch, n_tiles), 8)


def _linear_kernel(x_ref, w_ref, b_ref, o_ref):
    # x_ref: [tm, 128], w_ref: [128, 784], b_ref: [1, 784], o_ref: [tm, 784]
    acc = jnp.dot(x_ref[...], w_ref[...], preferred_element_type=jnp.float32)
    o_ref[...] = (acc + b_ref[...]).astype(o_ref.dtype)


def prepare_decoder_params(weight, bias):
    """One-time param prep: PyTorch-layout weight [784, 128] -> [128, 784]
    (transposed once, outside the per-call path) and bias [784] -> [1, 784]."""
    w_t = jnp.asarray(weight.T)              # [128, 784]
    b_row = jnp.asarray(bias).reshape(1, -1)  # [1, 784]
    return w_t, b_row


def decoder_forward(x, w_t, b_row, *, tm=None):
    """x: [B, 128] f32; w_t: [128, 784]; b_row: [1, 784]. Returns [B, 784]."""
    B = x.shape[0]
    if tm is None:
        tm = _choose_tm(B)

    grid = (_cdiv(max(B, 1), tm),)
    itemsize = jnp.dtype(x.dtype).itemsize
    cost = pl.CostEstimate(
        flops=2 * B * IN_FEATURES * OUT_FEATURES,
        transcendentals=0,
        bytes_accessed=(
            w_t.size * jnp.dtype(w_t.dtype).itemsize
            + b_row.size * jnp.dtype(b_row.dtype).itemsize
            + B * IN_FEATURES * itemsize
            + B * OUT_FEATURES * itemsize
        ),
    )

    return pl.pallas_call(
        _linear_kernel,
        out_shape=jax.ShapeDtypeStruct((B, OUT_FEATURES), x.dtype),
        grid_spec=pl.GridSpec(
            grid=grid,
            in_specs=[
                # Batch tile of x; ragged last tile handled by Pallas masking.
                pl.BlockSpec((tm, IN_FEATURES), lambda i: (i, 0)),
                # Weight / bias: constant block index -> VMEM-resident, no re-DMA.
                pl.BlockSpec((IN_FEATURES, OUT_FEATURES), lambda i: (0, 0)),
                pl.BlockSpec((1, OUT_FEATURES), lambda i: (0, 0)),
            ],
            out_specs=pl.BlockSpec((tm, OUT_FEATURES), lambda i: (i, 0)),
        ),
        compiler_params=pltpu.CompilerParams(
            dimension_semantics=("parallel",),
        ),
        cost_estimate=cost,
    )(x, w_t, b_row)


def reference_forward(x, weight, bias):
    return x @ weight.T + bias


if __name__ == "__main__":
    key = jax.random.PRNGKey(0)
    k_x, k_w, k_b, k_x2, k_x3 = jax.random.split(key, 5)

    # Deterministic parameter init (mimics nn.Linear uniform(-1/sqrt(in), 1/sqrt(in)))
    bound = 1.0 / (IN_FEATURES ** 0.5)
    weight = jax.random.uniform(
        k_w, (OUT_FEATURES, IN_FEATURES), jnp.float32, -bound, bound)
    bias = jax.random.uniform(
        k_b, (OUT_FEATURES,), jnp.float32, -bound, bound)

    # One-time param prep (hoisted out of the per-call path).
    w_t, b_row = prepare_decoder_params(weight, bias)

    def check(name, x):
        out = jax.block_until_ready(decoder_forward(x, w_t, b_row))
        ref = reference_forward(x, weight, bias)
        assert out.shape == ref.shape, (name, out.shape, ref.shape)
        assert jnp.allclose(out, ref, atol=1e-4, rtol=1e-4), \
            f"mismatch vs reference ({name})"

    # Small, 8-aligned batch: single exact tile.
    check("B=8", jax.random.normal(k_x, (8, IN_FEATURES), jnp.float32))
    # Non-tile-aligned batch: single ragged tile (tm=264, masked tail rows).
    check("B=260", jax.random.normal(k_x2, (260, IN_FEATURES), jnp.float32))
    # Multi-step grid: two 768-row tiles, weight stays VMEM-resident across steps.
    check("B=1536", jax.random.normal(k_x3, (1536, IN_FEATURES), jnp.float32))

    print("KERNEL_OK")
</pallas_src>

<mosaic_0001>
module attributes {stable_mosaic.version = 11 : i64} {
  func.func @_linear_kernel(%arg0: i32, %arg1: memref<8x128xf32, #tpu.memory_space<vmem>>, %arg2: memref<128x784xf32, #tpu.memory_space<vmem>>, %arg3: memref<1x784xf32, #tpu.memory_space<vmem>>, %arg4: memref<8x784xf32, #tpu.memory_space<vmem>>) attributes {dimension_semantics = [#tpu.dimension_semantics<parallel>], iteration_bounds = array<i64: 1>, scalar_prefetch = 0 : i64, scratch_operands = 0 : i64, tpu.core_type = #tpu.core_type<tc>, window_params = [{transform_indices = @transform_0, window_bounds = array<i64: 8, 128>}, {pipeline_mode = #tpu.pipeline_mode<synchronous>, transform_indices = @transform_1, window_bounds = array<i64: 128, 784>}, {pipeline_mode = #tpu.pipeline_mode<synchronous>, transform_indices = @transform_2, window_bounds = array<i64: 1, 784>}, {transform_indices = @transform_3, window_bounds = array<i64: 8, 784>}]} {
    %c0 = arith.constant 0 : index
    %c0_0 = arith.constant 0 : index
    %0 = vector.load %arg1[%c0, %c0_0] : memref<8x128xf32, #tpu.memory_space<vmem>>, vector<8x128xf32>
    %c0_1 = arith.constant 0 : index
    %c0_2 = arith.constant 0 : index
    %1 = vector.load %arg2[%c0_1, %c0_2] : memref<128x784xf32, #tpu.memory_space<vmem>>, vector<128x784xf32>
    %cst = arith.constant dense<0.000000e+00> : vector<8x784xf32>
    %2 = tpu.matmul %0, %1, %cst {dimension_numbers = #tpu.dot_dimension_numbers<[1], [0], [0], [1], [0, 0, 1, 1], [], []>} : vector<8x128xf32>, vector<128x784xf32>, vector<8x784xf32> -> vector<8x784xf32>
    %c0_3 = arith.constant 0 : index
    %c0_4 = arith.constant 0 : index
    %3 = vector.load %arg3[%c0_3, %c0_4] : memref<1x784xf32, #tpu.memory_space<vmem>>, vector<1x784xf32>
    %4 = vector.broadcast %3 : vector<1x784xf32> to vector<8x784xf32>
    %5 = arith.addf %2, %4 : vector<8x784xf32>
    %c0_5 = arith.constant 0 : index
    %c0_6 = arith.constant 0 : index
    %6 = vector.load %arg4[%c0_5, %c0_6] : memref<8x784xf32, #tpu.memory_space<vmem>>, vector<8x784xf32>
    tpu.vector_store %arg4[%c0_5, %c0_6], %5 {strides = array<i32>} : memref<8x784xf32, #tpu.memory_space<vmem>>, vector<8x784xf32>,
    return
  }
  func.func @transform_0(%arg0: i32) -> (i32, i32) {
    %c0_i32 = arith.constant 0 : i32
    %c0_i32_0 = arith.constant 0 : i32
    return %arg0, %c0_i32 : i32, i32
  }
  func.func @transform_1(%arg0: i32) -> (i32, i32) {
    %c0_i32 = arith.constant 0 : i32
    %c0_i32_0 = arith.constant 0 : i32
    %c0_i32_1 = arith.constant 0 : i32
    return %c0_i32, %c0_i32_0 : i32, i32
  }
  func.func @transform_2(%arg0: i32) -> (i32, i32) {
    %c0_i32 = arith.constant 0 : i32
    %c0_i32_0 = arith.constant 0 : i32
    %c0_i32_1 = arith.constant 0 : i32
    return %c0_i32, %c0_i32_0 : i32, i32
  }
  func.func @transform_3(%arg0: i32) -> (i32, i32) {
    %c0_i32 = arith.constant 0 : i32
    %c0_i32_0 = arith.constant 0 : i32
    return %arg0, %c0_i32 : i32, i32
  }
}

</mosaic_0001>

<bundles_post_ra>
// kernel: tpu_custom_call.1
= control target key start
LH: loop header
LB: loop body
LE: loop exit
PB: predicated region body
PF: predicated region fallthrough
CT: control target
= control target key end

     0   :  { %s941_s0 = inlined_call_operand.vmem [shape: f32[8,128], index: 0, kind: input, shape index: {}]   ;;  %s942_s1 = inlined_call_operand.vmem [shape: f32[128,784], index: 1, kind: input, shape index: {}]   ;;  %s943_s2 = inlined_call_operand.vmem [shape: f32[1,784], index: 2, kind: input, shape index: {}]   ;;  %s944_s3 = inlined_call_operand.hbm [shape: f32[8,784], index: 3, kind: output, shape index: {}]  }
   0x1   :  { %v122_v0 = vld [vmem:[%s942_s1 + $0x350] sm:$0xff]  ;;  %v124_v1 = vld [vmem:[%s942_s1 + $0x360] sm:$0xff]  ;;  %v121_v2 = vld [vmem:[%s942_s1 + $0x348] sm:$0xff] }
   0x2   :  { %165 = vmatprep.subr.mxu0 %v122_v0  ;;  %236 = vmatprep.subr.mxu1 %v124_v1  ;;  %v123_v3 = vld [vmem:[%s942_s1 + $0x358] sm:$0xff]  ;;  %v117_v5 = vld [vmem:[%s942_s1 + $0x328] sm:$0xff]  ;;  %v114_v6 = vld [vmem:[%s942_s1 + $0x310] sm:$0xff] }
   0x3   :  { %v115_v4 = vld [vmem:[%s942_s1 + $0x318] sm:$0xff]  ;;  %166 = vmatpush1.msra.mxu0 %v121_v2  ;;  %237 = vmatpush1.msra.mxu1 %v123_v3  ;;  %v116_v7 = vld [vmem:[%s942_s1 + $0x320] sm:$0xff]  ;;  %v110_v9 = vld [vmem:[%s942_s1 + $0x2f0] sm:$0xff]  ;;  %v547_v2 = vmov 0.0  }
   0x4   :  { %v108_v8 = vld [vmem:[%s942_s1 + $0x2e0] sm:$0xff]  ;;  %167 = vmatprep.subr.mxu0 %v115_v4  ;;  %238 = vmatprep.subr.mxu1 %v117_v5  ;;  %v107_v10 = vld [vmem:[%s942_s1 + $0x2d8] sm:$0xff]  ;;  %v109_v11 = vld [vmem:[%s942_s1 + $0x2e8] sm:$0xff] }
   0x5   :  { %168 = vmatpush1.msra.mxu0 %v114_v6  ;;  %239 = vmatpush1.msra.mxu1 %v116_v7  ;;  %v101_v12 = vld [vmem:[%s942_s1 + $0x2a8] sm:$0xff]  ;;  %v103_v13 = vld [vmem:[%s942_s1 + $0x2b8] sm:$0xff]  ;;  %v100_v14 = vld [vmem:[%s942_s1 + $0x2a0] sm:$0xff] }
   0x6   :  { %169 = vmatprep.subr.mxu0 %v108_v8  ;;  %240 = vmatprep.subr.mxu1 %v110_v9  ;;  %v102_v15 = vld [vmem:[%s942_s1 + $0x2b0] sm:$0xff]  ;;  %v96_v17 = vld [vmem:[%s942_s1 + $0x280] sm:$0xff]  ;;  %v93_v18 = vld [vmem:[%s942_s1 + $0x268] sm:$0xff] }
   0x7   :  { %170 = vmatpush1.msra.mxu0 %v107_v10  ;;  %241 = vmatpush1.msra.mxu1 %v109_v11  ;;  %v94_v16 = vld [vmem:[%s942_s1 + $0x270] sm:$0xff]  ;;  %v95_v19 = vld [vmem:[%s942_s1 + $0x278] sm:$0xff]  ;;  %v89_v21 = vld [vmem:[%s942_s1 + $0x248] sm:$0xff] }
   0x8   :  { %171 = vmatprep.subr.mxu0 %v101_v12  ;;  %242 = vmatprep.subr.mxu1 %v103_v13  ;;  %v87_v20 = vld [vmem:[%s942_s1 + $0x238] sm:$0xff]  ;;  %v86_v22 = vld [vmem:[%s942_s1 + $0x230] sm:$0xff]  ;;  %v88_v23 = vld [vmem:[%s942_s1 + $0x240] sm:$0xff] }
   0x9   :  { %172 = vmatpush1.msra.mxu0 %v100_v14  ;;  %243 = vmatpush1.msra.mxu1 %v102_v15  ;;  %v80_v24 = vld [vmem:[%s942_s1 + $0x200] sm:$0xff]  ;;  %v82_v25 = vld [vmem:[%s942_s1 + $0x210] sm:$0xff]  ;;  %v79_v26 = vld [vmem:[%s942_s1 + $0x1f8] sm:$0xff] }
   0xa   :  { %173 = vmatprep.subr.mxu0 %v94_v16  ;;  %244 = vmatprep.subr.mxu1 %v96_v17  ;;  %v81_v27 = vld [vmem:[%s942_s1 + $0x208] sm:$0xff]  ;;  %v75_v29 = vld [vmem:[%s942_s1 + $0x1d8] sm:$0xff]  ;;  %v72_v30 = vld [vmem:[%s942_s1 + $0x1c0] sm:$0xff] }
   0xb   :  { %174 = vmatpush1.msra.mxu0 %v93_v18  ;;  %245 = vmatpush1.msra.mxu1 %v95_v19  ;;  %v73_v28 = vld [vmem:[%s942_s1 + $0x1c8] sm:$0xff]  ;;  %v74_v31 = vld [vmem:[%s942_s1 + $0x1d0] sm:$0xff]  ;;  %v68_v33 = vld [vmem:[%s942_s1 + $0x1a0] sm:$0xff] }
   0xc   :  { %175 = vmatprep.subr.mxu0 %v87_v20  ;;  %246 = vmatprep.subr.mxu1 %v89_v21  ;;  %v66_v32 = vld [vmem:[%s942_s1 + $0x190] sm:$0xff]  ;;  %v65_v34 = vld [vmem:[%s942_s1 + $0x188] sm:$0xff]  ;;  %v67_v35 = vld [vmem:[%s942_s1 + $0x198] sm:$0xff] }
   0xd   :  { %176 = vmatpush1.msra.mxu0 %v86_v22  ;;  %247 = vmatpush1.msra.mxu1 %v88_v23  ;;  %v59_v36 = vld [vmem:[%s942_s1 + $0x158] sm:$0xff]  ;;  %v61_v37 = vld [vmem:[%s942_s1 + $0x168] sm:$0xff]  ;;  %v58_v38 = vld [vmem:[%s942_s1 + $0x150] sm:$0xff] }
   0xe   :  { %177 = vmatprep.subr.mxu0 %v80_v24  ;;  %248 = vmatprep.subr.mxu1 %v82_v25  ;;  %v60_v39 = vld [vmem:[%s942_s1 + $0x160] sm:$0xff]  ;;  %v54_v41 = vld [vmem:[%s942_s1 + $0x130] sm:$0xff]  ;;  %v51_v42 = vld [vmem:[%s942_s1 + $0x118] sm:$0xff] }
   0xf   :  { %178 = vmatpush1.msra.mxu0 %v79_v26  ;;  %249 = vmatpush1.msra.mxu1 %v81_v27  ;;  %v52_v40 = vld [vmem:[%s942_s1 + $0x120] sm:$0xff]  ;;  %v53_v43 = vld [vmem:[%s942_s1 + $0x128] sm:$0xff]  ;;  %v47_v45 = vld [vmem:[%s942_s1 + $0xf8] sm:$0xff] }
  0x10   :  { %179 = vmatprep.subr.mxu0 %v73_v28  ;;  %250 = vmatprep.subr.mxu1 %v75_v29  ;;  %v45_v44 = vld [vmem:[%s942_s1 + $0xe8] sm:$0xff]  ;;  %v44_v46 = vld [vmem:[%s942_s1 + $0xe0] sm:$0xff]  ;;  %v46_v47 = vld [vmem:[%s942_s1 + $0xf0] sm:$0xff] }
  0x11   :  { %180 = vmatpush1.msra.mxu0 %v72_v30  ;;  %251 = vmatpush1.msra.mxu1 %v74_v31  ;;  %v38_v48 = vld [vmem:[%s942_s1 + $0xb0] sm:$0xff]  ;;  %v40_v49 = vld [vmem:[%s942_s1 + $0xc0] sm:$0xff]  ;;  %v37_v50 = vld [vmem:[%s942_s1 + $0xa8] sm:$0xff] }
  0x12   :  { %181 = vmatprep.subr.mxu0 %v66_v32  ;;  %252 = vmatprep.subr.mxu1 %v68_v33  ;;  %v39_v51 = vld [vmem:[%s942_s1 + $0xb8] sm:$0xff]  ;;  %v33_v53 = vld [vmem:[%s942_s1 + $0x88] sm:$0xff]  ;;  %v30_v54 = vld [vmem:[%s942_s1 + $0x70] sm:$0xff] }
  0x13   :  { %182 = vmatpush1.msra.mxu0 %v65_v34  ;;  %253 = vmatpush1.msra.mxu1 %v67_v35  ;;  %v31_v52 = vld [vmem:[%s942_s1 + $0x78] sm:$0xff]  ;;  %v32_v55 = vld [vmem:[%s942_s1 + $0x80] sm:$0xff]  ;;  %v26_v57 = vld [vmem:[%s942_s1 + $0x50] sm:$0xff] }
  0x14   :  { %183 = vmatprep.subr.mxu0 %v59_v36  ;;  %254 = vmatprep.subr.mxu1 %v61_v37  ;;  %v24_v56 = vld [vmem:[%s942_s1 + $0x40] sm:$0xff]  ;;  %v23_v58 = vld [vmem:[%s942_s1 + $0x38] sm:$0xff]  ;;  %v25_v59 = vld [vmem:[%s942_s1 + $0x48] sm:$0xff] }
  0x15   :  { %184 = vmatpush1.msra.mxu0 %v58_v38  ;;  %255 = vmatpush1.msra.mxu1 %v60_v39  ;;  %v17_v60 = vld [vmem:[%s942_s1 + $0x8] sm:$0xff]  ;;  %v19_v61 = vld [vmem:[%s942_s1 + $0x18] sm:$0xff]  ;;  %v16_v62 = vld [vmem:[%s942_s1] sm:$0xff] }
  0x16   :  { %185 = vmatprep.subr.mxu0 %v52_v40  ;;  %256 = vmatprep.subr.mxu1 %v54_v41  ;;  %v18_v63 = vld [vmem:[%s942_s1 + $0x10] sm:$0xff]  ;;  %v765_v0 = vld [vmem:[%s941_s0] sm:$0xff]  ;;  %v125_v3 = vld [vmem:[%s942_s1 + $0x368] sm:$0xff] }
  0x17   :  { %186 = vmatpush1.msra.mxu0 %v51_v42  ;;  %257 = vmatpush1.msra.mxu1 %v53_v43  ;;  %v126_v1 = vld [vmem:[%s942_s1 + $0x370] sm:$0xff]  ;;  %v127_v4 = vld [vmem:[%s942_s1 + $0x378] sm:$0xff]  ;;  %v120_v7 = vld [vmem:[%s942_s1 + $0x340] sm:$0xff] }
  0x18   :  { %187 = vmatprep.subr.mxu0 %v45_v44  ;;  %258 = vmatprep.subr.mxu1 %v47_v45  ;;  %v119_v5 = vld [vmem:[%s942_s1 + $0x338] sm:$0xff]  ;;  %v118_v6 = vld [vmem:[%s942_s1 + $0x330] sm:$0xff]  ;;  %v112_v8 = vld [vmem:[%s942_s1 + $0x300] sm:$0xff] }
  0x19   :  { %188 = vmatpush1.msra.mxu0 %v44_v46  ;;  %259 = vmatpush1.msra.mxu1 %v46_v47  ;;  %v111_v9 = vld [vmem:[%s942_s1 + $0x2f8] sm:$0xff]  ;;  %v113_v10 = vld [vmem:[%s942_s1 + $0x308] sm:$0xff] }
  0x1a   :  { %189 = vmatprep.subr.mxu0 %v38_v48  ;;  %260 = vmatprep.subr.mxu1 %v40_v49  ;;  %v105_v11 = vld [vmem:[%s942_s1 + $0x2c8] sm:$0xff] }
  0x1b   :  { %190 = vmatpush1.msra.mxu0 %v37_v50  ;;  %261 = vmatpush1.msra.mxu1 %v39_v51 }
  0x1c   :  { %191 = vmatprep.subr.mxu0 %v31_v52  ;;  %262 = vmatprep.subr.mxu1 %v33_v53 }
  0x1d   :  { %192 = vmatpush1.msra.mxu0 %v30_v54  ;;  %263 = vmatpush1.msra.mxu1 %v32_v55 }
  0x1e   :  { %193 = vmatprep.subr.mxu0 %v24_v56  ;;  %264 = vmatprep.subr.mxu1 %v26_v57 }
  0x1f   :  { %194 = vmatpush1.msra.mxu0 %v23_v58  ;;  %265 = vmatpush1.msra.mxu1 %v25_v59 }
  0x20   :  { %195 = vmatprep.subr.mxu0 %v17_v60  ;;  %266 = vmatprep.subr.mxu1 %v19_v61 }
  0x21   :  { %196 = vmatpush1.msra.mxu0 %v16_v62  ;;  %229 = vmatprep.mubr.f32.mxu0 %v547_v2 }
  0x22   :  { %267 = vmatpush1.msra.mxu1 %v18_v63  ;;  %230 = vmatmul.mubr.f32.vlgmr.msra.gmra.mxu0 %v765_v0 }
  0x23   :  { %300 = vmatprep.mubr.f32.mxu1 %v547_v2  ;;  %307 = vmatprep.subr.mxu0 %v126_v1 }
  0x24   :  { %487 = vmatprep.subr.mxu1 %v547_v2  ;;  %301 = vmatmul.mubr.f32.vlgmr.msra.gmra.mxu1 %v765_v0 }
  0x25   :  { %308 = vmatpush1.msra.mxu0 %v125_v3  ;;  %488 = vmatpush3.msra.mxu1 %v127_v4 }
  0x26   :  { %309 = vmatprep.subr.mxu0 %v119_v5  ;;  %489 = vmatprep.subr.mxu1 %v547_v2 }
  0x27   :  { %310 = vmatpush1.msra.mxu0 %v118_v6  ;;  %490 = vmatpush3.msra.mxu1 %v120_v7 }
  0x28   :  { %8 = vsyncpa [#allocation3], 0  ;;  %311 = vmatprep.subr.mxu0 %v112_v8  ;;  %491 = vmatprep.subr.mxu1 %v547_v2  ;;  %v104_v12 = vld [vmem:[%s942_s1 + $0x2c0] sm:$0xff]  ;;  %v106_v13 = vld [vmem:[%s942_s1 + $0x2d0] sm:$0xff]  ;;  %vm548_vm0 = vmmov 0   ;;  %v130_v50 = vlaneseq  ;;  %vm454_vm1 = vcmask 130048  }
  0x29   :  { %312 = vmatpush1.msra.mxu0 %v111_v9  ;;  %492 = vmatpush3.msra.mxu1 %v113_v10  ;;  %v98_v14 = vld [vmem:[%s942_s1 + $0x290] sm:$0xff]  ;;  %v97_v15 = vld [vmem:[%s942_s1 + $0x288] sm:$0xff]  ;;  %v99_v16 = vld [vmem:[%s942_s1 + $0x298] sm:$0xff] }
  0x2a   :  { %313 = vmatprep.subr.mxu0 %v105_v11  ;;  %493 = vmatprep.subr.mxu1 %v547_v2  ;;  %v91_v17 = vld [vmem:[%s942_s1 + $0x258] sm:$0xff]  ;;  %v90_v18 = vld [vmem:[%s942_s1 + $0x250] sm:$0xff]  ;;  %v92_v19 = vld [vmem:[%s942_s1 + $0x260] sm:$0xff]  ;;  %v131_v51 = vshrl.u32 %v130_v50, 7 }
  0x2b   :  { %314 = vmatpush1.msra.mxu0 %v104_v12  ;;  %494 = vmatpush3.msra.mxu1 %v106_v13  ;;  %v84_v20 = vld [vmem:[%s942_s1 + $0x220] sm:$0xff]  ;;  %v83_v21 = vld [vmem:[%s942_s1 + $0x218] sm:$0xff]  ;;  %v85_v22 = vld [vmem:[%s942_s1 + $0x228] sm:$0xff] }
  0x2c   :  { %315 = vmatprep.subr.mxu0 %v98_v14  ;;  %495 = vmatprep.subr.mxu1 %v547_v2  ;;  %v77_v23 = vld [vmem:[%s942_s1 + $0x1e8] sm:$0xff]  ;;  %v76_v24 = vld [vmem:[%s942_s1 + $0x1e0] sm:$0xff]  ;;  %v78_v25 = vld [vmem:[%s942_s1 + $0x1f0] sm:$0xff]  ;;  %v132_v52 = vsub.s32 0, %v131_v51  ;;  %v140_v54 = vsub.s32 2, %v131_v51  ;;  %v136_v55 = vsub.s32 1, %v131_v51 }
  0x2d   :  { %316 = vmatpush1.msra.mxu0 %v97_v15  ;;  %496 = vmatpush3.msra.mxu1 %v99_v16  ;;  %v70_v26 = vld [vmem:[%s942_s1 + $0x1b0] sm:$0xff]  ;;  %v69_v27 = vld [vmem:[%s942_s1 + $0x1a8] sm:$0xff]  ;;  %v71_v28 = vld [vmem:[%s942_s1 + $0x1b8] sm:$0xff]  ;;  %v144_v57 = vsub.s32 3, %v131_v51  ;;  %v148_v5 = vsub.s32 4, %v131_v51  ;;  %v156_v6 = vsub.s32 6, %v131_v51 }
  0x2e   :  { %317 = vmatprep.subr.mxu0 %v91_v17  ;;  %497 = vmatprep.subr.mxu1 %v547_v2  ;;  %v63_v29 = vld [vmem:[%s942_s1 + $0x178] sm:$0xff]  ;;  %v62_v30 = vld [vmem:[%s942_s1 + $0x170] sm:$0xff]  ;;  %v64_v31 = vld [vmem:[%s942_s1 + $0x180] sm:$0xff]  ;;  %v152_v7 = vsub.s32 5, %v131_v51 }
  0x2f   :  { %318 = vmatpush1.msra.mxu0 %v90_v18  ;;  %498 = vmatpush3.msra.mxu1 %v92_v19  ;;  %v56_v32 = vld [vmem:[%s942_s1 + $0x140] sm:$0xff]  ;;  %v55_v33 = vld [vmem:[%s942_s1 + $0x138] sm:$0xff]  ;;  %v57_v34 = vld [vmem:[%s942_s1 + $0x148] sm:$0xff] }
  0x30   :  { %319 = vmatprep.subr.mxu0 %v84_v20  ;;  %499 = vmatprep.subr.mxu1 %v547_v2  ;;  %v49_v35 = vld [vmem:[%s942_s1 + $0x108] sm:$0xff]  ;;  %v48_v36 = vld [vmem:[%s942_s1 + $0x100] sm:$0xff]  ;;  %v50_v37 = vld [vmem:[%s942_s1 + $0x110] sm:$0xff] }
  0x31   :  { %320 = vmatpush1.msra.mxu0 %v83_v21  ;;  %500 = vmatpush3.msra.mxu1 %v85_v22  ;;  %v42_v38 = vld [vmem:[%s942_s1 + $0xd0] sm:$0xff]  ;;  %v41_v39 = vld [vmem:[%s942_s1 + $0xc8] sm:$0xff]  ;;  %v43_v40 = vld [vmem:[%s942_s1 + $0xd8] sm:$0xff] }
  0x32   :  { %321 = vmatprep.subr.mxu0 %v77_v23  ;;  %501 = vmatprep.subr.mxu1 %v547_v2  ;;  %v35_v41 = vld [vmem:[%s942_s1 + $0x98] sm:$0xff]  ;;  %v34_v42 = vld [vmem:[%s942_s1 + $0x90] sm:$0xff]  ;;  %v36_v43 = vld [vmem:[%s942_s1 + $0xa0] sm:$0xff] }
  0x33   :  { %322 = vmatpush1.msra.mxu0 %v76_v24  ;;  %502 = vmatpush3.msra.mxu1 %v78_v25  ;;  %v28_v44 = vld [vmem:[%s942_s1 + $0x60] sm:$0xff]  ;;  %v27_v45 = vld [vmem:[%s942_s1 + $0x58] sm:$0xff]  ;;  %v29_v46 = vld [vmem:[%s942_s1 + $0x68] sm:$0xff] }
  0x34   :  { %323 = vmatprep.subr.mxu0 %v70_v26  ;;  %503 = vmatprep.subr.mxu1 %v547_v2  ;;  %v21_v47 = vld [vmem:[%s942_s1 + $0x28] sm:$0xff]  ;;  %v20_v48 = vld [vmem:[%s942_s1 + $0x20] sm:$0xff]  ;;  %v22_v49 = vld [vmem:[%s942_s1 + $0x30] sm:$0xff]  ;;  %s549_s1 = smov [#allocation2]  }
  0x35   :  { %324 = vmatpush1.msra.mxu0 %v69_v27  ;;  %504 = vmatpush3.msra.mxu1 %v71_v28  ;;  %v128_v53 = vld [vmem:[%s943_s2] sm:$0x7f]  ;;  %s462_s2 = sshll.u32 %s549_s1, 4  ;;  %s463_s2 = int_to_ptr.vmem [resolvable:$true] %s462_s2 }
  0x36   :  { %325 = vmatprep.subr.mxu0 %v63_v29  ;;  %505 = vmatprep.subr.mxu1 %v547_v2  ;;  %v133_v56 = vrot.slane %v128_v53, %v132_v52  ;;  %v141_v58 = vrot.slane %v128_v53, %v140_v54  ;;  %v137_v59 = vrot.slane %v128_v53, %v136_v55  ;;  %s525_s20 = scalar_lea.vmem %s463_s2, 896  ;;  %p530_p1 = scmp.lt.s32.totalorder %s463_s2, %s463_s2 }
  0x37   :  { %326 = vmatpush1.msra.mxu0 %v62_v30  ;;  %506 = vmatpush3.msra.mxu1 %v64_v31  ;;  %v145_v62 = vrot.slane %v128_v53, %v144_v57  ;;  %v149_v8 = vrot.slane %v128_v53, %v148_v5  ;;  %v157_v9 = vrot.slane %v128_v53, %v156_v6  ;;  %p526_p0 = scmp.ne.s32.totalorder %s463_s2, %s525_s20  ;;  %p531_p2 = scmp.lt.s32.totalorder %s525_s20, %s525_s20 }
  0x38   :  { %327 = vmatprep.subr.mxu0 %v56_v32  ;;  %507 = vmatprep.subr.mxu1 %v547_v2  ;;  %v153_v10 = vrot.slane %v128_v53, %v152_v7 }
  0x39   :  { %328 = vmatpush1.msra.mxu0 %v55_v33  ;;  %508 = vmatpush3.msra.mxu1 %v57_v34  ;;  %p532_p3 = por %p531_p2, %p530_p1 }
  0x3a   :  { %329 = vmatprep.subr.mxu0 %v49_v35  ;;  %509 = vmatprep.subr.mxu1 %v547_v2 }
  0x3b   :  { %330 = vmatpush1.msra.mxu0 %v48_v36  ;;  %510 = vmatpush3.msra.mxu1 %v50_v37  ;;  %p533_p4 = pnand %p532_p3, %p526_p0 }
  0x3c   :  { %331 = vmatprep.subr.mxu0 %v42_v38  ;;  %511 = vmatprep.subr.mxu1 %v547_v2 }
  0x3d   :  { %332 = vmatpush1.msra.mxu0 %v41_v39  ;;  %512 = vmatpush3.msra.mxu1 %v43_v40 }
  0x3e   :  { %333 = vmatprep.subr.mxu0 %v35_v41  ;;  %513 = vmatprep.subr.mxu1 %v547_v2 }
  0x3f   :  { %334 = vmatpush1.msra.mxu0 %v34_v42  ;;  %514 = vmatpush3.msra.mxu1 %v36_v43 }
  0x40   :  { %335 = vmatprep.subr.mxu0 %v28_v44  ;;  %515 = vmatprep.subr.mxu1 %v547_v2 }
  0x41   :  { %336 = vmatpush1.msra.mxu0 %v27_v45  ;;  %516 = vmatpush3.msra.mxu1 %v29_v46 }
  0x42   :  { %337 = vmatprep.subr.mxu0 %v21_v47  ;;  %517 = vmatprep.subr.mxu1 %v547_v2 }
  0x43   :  { %338 = vmatpush1.msra.mxu0 %v20_v48  ;;  %371 = vmatprep.mubr.f32.mxu0 %v547_v2 }
  0x44   :  { %518 = vmatpush3.msra.mxu1 %v22_v49  ;;  %519 = vmatprep.mubr.msk.f32.mxu1 %vm548_vm0, %v547_v2 }
  0x45   :  { %372 = vmatmul.mubr.f32.vlgmr.msra.gmra.mxu0 %v765_v0  ;;  %520 = vmatmul.mubr.f32.vlgmr.msra.gmra.mxu1 %v765_v0 }
  0xe2   :  { %v231_v60 = vpop.f32.mrf.mxu0 }
  0xe3   :  { %v232_v61 = vadd.f32 %v231_v60, %v133_v56 }
  0xe4   :  { %v302_v63 = vpop.f32.mrf.mxu1  ;;  %v233_v1 = vpop.f32.mrf.mxu0 }
  0xe5   :  { %448 = vst [vmem:[#allocation2] sm:$0xff] %v232_v61  ;;  %v303_v0 = vadd.f32 %v302_v63, %v141_v58  ;;  %v234_v2 = vadd.f32 %v233_v1, %v137_v59 }
  0xe6   :  { %v304_v3 = vpop.f32.mrf.mxu1 }
  0xe7   :  { %450 = vst [vmem:[#allocation2 + $0x10] sm:$0xff] %v303_v0  ;;  %449 = vst [vmem:[#allocation2 + $0x8] sm:$0xff] %v234_v2  ;;  %v305_v4 = vadd.f32 %v304_v3, %v145_v62 }
  0xe9   :  { %451 = vst [vmem:[#allocation2 + $0x18] sm:$0xff] %v305_v4 }
 0x105   :  { %v373_v11 = vpop.f32.mrf.mxu0  ;;  %v444_v12 = vpop.f32.mrf.mxu1 }
 0x106   :  { %v374_v13 = vadd.f32 %v373_v11, %v149_v8  ;;  %v445_v14 = vadd.f32 %v444_v12, %v157_v9 }
 0x107   :  { %v375_v15 = vpop.f32.mrf.mxu0  ;;  %v521_v16 = vpop.f32.mrf.mxu1 }
 0x108   :  { %452 = vst [vmem:[#allocation2 + $0x20] sm:$0xff] %v374_v13  ;;  %455 = vst.msk [vmem:[#allocation2 + $0x30] sm:$0xff] %vm454_vm1, %v445_v14  ;;  %v376_v17 = vadd.f32 %v375_v15, %v153_v10 }
 0x10a   :  { %453 = vst [vmem:[#allocation2 + $0x28] sm:$0xff] %v376_v17 }
 0x10b   :  { %536 = shalt.err (!%p533_p4)
}
 0x10c   :  { %465 = dma.vmem_to_hbm [thread:$0]  %s463_s2, 896, %s944_s3, [#allocation3]  }
 0x10d   :  { %545 = dma.done.wait [#allocation3], 896  }
 0x10e   :  { %546 = vsyncadd [#allocation3], 4294966400 }
 0x10f   :  { %469 = vsyncpa [#allocation3], 1 }

</bundles_post_ra>
